<compile_context>
chip_gen: v7x
topology: tpu7x:2x2x1
jax: 0.10.0
libtpu: 0.0.40
codegen_flags: <defaults>
</compile_context>

<pallas_src>
import jax
import jax.numpy as jnp
from jax.experimental import pallas as pl
from jax.experimental.pallas import tpu as pltpu


def _autoencoder_kernel(x_ref,
                        w1_ref, b1_ref, w2_ref, b2_ref,
                        w34_ref, b34_ref,
                        w5_ref, b5_ref, w6_ref, b6_ref,
                        o_ref):
    wdt = w1_ref.dtype                                               # bf16 (or f32)
    x = x_ref[...]                                                   # (TB, 256) f32

    # ---- encoder ----
    h = jnp.dot(x.astype(wdt), w1_ref[...],
                preferred_element_type=jnp.float32) + b1_ref[...]
    h = jnp.maximum(h, 0.0)                                          # (TB, 128) f32
    h = jnp.dot(h.astype(wdt), w2_ref[...],
                preferred_element_type=jnp.float32) + b2_ref[...]
    h = jnp.maximum(h, 0.0)                                          # (TB, 32)  f32

    # ---- fused bottleneck: Linear(32,8) then Linear(8,32), no activation between,
    #      so (h@w3+b3)@w4+b4 == h@(w3@w4) + (b3@w4+b4); ReLU follows as in decoder ----
    d = jnp.dot(h.astype(wdt), w34_ref[...],
                preferred_element_type=jnp.float32) + b34_ref[...]
    d = jnp.maximum(d, 0.0)                                          # (TB, 32)  f32

    # ---- decoder tail ----
    d = jnp.dot(d.astype(wdt), w5_ref[...],
                preferred_element_type=jnp.float32) + b5_ref[...]
    d = jnp.maximum(d, 0.0)                                          # (TB, 128) f32
    d = jnp.dot(d.astype(wdt), w6_ref[...],
                preferred_element_type=jnp.float32) + b6_ref[...]
    # (TB, 256) -- no final activation

    o_ref[...] = d.astype(o_ref.dtype)


def _round_up(n, m):
    return ((n + m - 1) // m) * m


def prepare_params(params, *, use_bf16=True):
    """One-time parameter prep (call once per parameter set, not per forward):
    pre-fuse the activation-free 32->8->32 bottleneck into a single 32x32 matmul
    and cast matmul weights to bf16 for the MXU. Biases stay f32 (f32 accumulate)."""
    wdt = jnp.bfloat16 if use_bf16 else jnp.float32
    w34 = jnp.dot(params["w3"], params["w4"], preferred_element_type=jnp.float32)
    b34 = jnp.dot(params["b3"], params["w4"], preferred_element_type=jnp.float32) \
        + params["b4"]
    return {
        "w1": params["w1"].astype(wdt), "b1": params["b1"].astype(jnp.float32),
        "w2": params["w2"].astype(wdt), "b2": params["b2"].astype(jnp.float32),
        "w34": w34.astype(wdt),         "b34": b34.astype(jnp.float32),
        "w5": params["w5"].astype(wdt), "b5": params["b5"].astype(jnp.float32),
        "w6": params["w6"].astype(wdt), "b6": params["b6"].astype(jnp.float32),
    }


def autoencoder_forward(x, prepared, *, tile_b=1024):
    """x: (B, W*H) float32. prepared: output of prepare_params()."""
    B, D_in = x.shape
    D_out = prepared["w6"].shape[1]

    # Batch tile: multiple of 8 (sublane), no bigger than needed.  No padding of x:
    # grid uses cdiv and Pallas masks the partial last block.
    tile_b = max(8, min(tile_b, _round_up(B, 8)))
    tile_b = _round_up(tile_b, 8)
    # v7x megacore: make sure there are >= 2 grid steps when there is enough work,
    # so ("parallel",) actually shards across both TensorCores.
    if pl.cdiv(B, tile_b) < 2 and B > 8:
        tile_b = _round_up(pl.cdiv(B, 2), 8)
    grid = (pl.cdiv(B, tile_b),)

    w1, b1 = prepared["w1"], prepared["b1"]
    w2, b2 = prepared["w2"], prepared["b2"]
    w34, b34 = prepared["w34"], prepared["b34"]
    w5, b5 = prepared["w5"], prepared["b5"]
    w6, b6 = prepared["w6"], prepared["b6"]

    def full_spec(shape):
        # Whole array resident in VMEM; constant block index -> no re-DMA per step.
        return pl.BlockSpec(shape, lambda i: tuple(0 for _ in shape))

    # Tight VMEM budget from the real footprint (double-buffered x/out tiles,
    # resident params, live f32/bf16 activation intermediates) + headroom.
    # Floor 32 MiB (beats v5e's 16 MiB scoped default), cap 48 MiB (< v7x 64 MiB).
    tile_row_bytes = max(D_in, D_out) * 4
    io_bytes = 2 * 2 * tile_b * tile_row_bytes                     # in + out, 2 bufs each
    act_bytes = 8 * tile_b * tile_row_bytes                        # live intermediates
    param_bytes = sum(int(p.size) * p.dtype.itemsize for p in prepared.values())
    vmem_limit = int(min(48 << 20,
                         max(32 << 20, io_bytes + act_bytes + param_bytes + (2 << 20))))

    # Advisory cost for XLA's scheduler around the custom call.
    flops_per_row = 2 * (D_in * 128 + 128 * 32 + 32 * 32 + 32 * 128 + 128 * D_out)
    cost = pl.CostEstimate(
        flops=int(B) * flops_per_row,
        transcendentals=0,
        bytes_accessed=int(B) * (D_in + D_out) * 4 + param_bytes,
    )

    out = pl.pallas_call(
        _autoencoder_kernel,
        out_shape=jax.ShapeDtypeStruct((B, D_out), x.dtype),
        grid_spec=pltpu.PrefetchScalarGridSpec(
            num_scalar_prefetch=0,
            grid=grid,
            in_specs=[
                pl.BlockSpec((tile_b, D_in), lambda i: (i, 0)),    # x tile
                full_spec(w1.shape), full_spec(b1.shape),
                full_spec(w2.shape), full_spec(b2.shape),
                full_spec(w34.shape), full_spec(b34.shape),
                full_spec(w5.shape), full_spec(b5.shape),
                full_spec(w6.shape), full_spec(b6.shape),
            ],
            out_specs=pl.BlockSpec((tile_b, D_out), lambda i: (i, 0)),
        ),
        compiler_params=pltpu.CompilerParams(
            dimension_semantics=("parallel",),     # shards grid steps across TCs on v7x
            vmem_limit_bytes=vmem_limit,
        ),
        cost_estimate=cost,
    )(x, w1, b1, w2, b2, w34, b34, w5, b5, w6, b6)

    return out


def init_params(key, W=16, H=16, feature_size=8):
    """Deterministic PyTorch-style uniform init: U(-1/sqrt(fan_in), 1/sqrt(fan_in)).
    Weights stored transposed relative to PyTorch, i.e. (in_features, out_features)."""
    dims = [
        (W * H, 128), (128, 32), (32, feature_size),     # encoder
        (feature_size, 32), (32, 128), (128, W * H),     # decoder
    ]
    params = {}
    for idx, (fan_in, fan_out) in enumerate(dims, start=1):
        key, kw, kb = jax.random.split(key, 3)
        bound = 1.0 / jnp.sqrt(jnp.float32(fan_in))
        params[f"w{idx}"] = jax.random.uniform(
            kw, (fan_in, fan_out), jnp.float32, -bound, bound)
        params[f"b{idx}"] = jax.random.uniform(
            kb, (1, fan_out), jnp.float32, -bound, bound)
    return params


def reference_forward(x, p):
    h = jnp.maximum(x @ p["w1"] + p["b1"], 0.0)
    h = jnp.maximum(h @ p["w2"] + p["b2"], 0.0)
    z = h @ p["w3"] + p["b3"]
    d = jnp.maximum(z @ p["w4"] + p["b4"], 0.0)
    d = jnp.maximum(d @ p["w5"] + p["b5"], 0.0)
    return d @ p["w6"] + p["b6"]


if __name__ == "__main__":
    key = jax.random.PRNGKey(0)
    k_param, k_x = jax.random.split(key)

    W, H, feature_size = 16, 16, 8
    B = 12  # deliberately not a multiple of the tile: exercises the partial last block

    params = init_params(k_param, W=W, H=H, feature_size=feature_size)
    prepared = prepare_params(params)                 # hoisted: once per param set
    x = jax.random.normal(k_x, (B, W * H), dtype=jnp.float32)

    out = autoencoder_forward(x, prepared)
    out = jax.block_until_ready(out)

    ref = reference_forward(x, params)                # f32 reference
    assert out.shape == (B, W * H)
    # bf16 MXU operands vs f32 reference -> loose tolerance (f32 accumulate keeps it tight-ish)
    assert jnp.allclose(out, ref, atol=3e-2, rtol=3e-2), "mismatch vs reference"

    print("KERNEL_OK")
</pallas_src>

<mosaic_0001>
module attributes {stable_mosaic.version = 11 : i64} {
  func.func @_autoencoder_kernel(%arg0: i32, %arg1: memref<8x256xf32, #tpu.memory_space<vmem>>, %arg2: memref<256x128xbf16, #tpu.memory_space<vmem>>, %arg3: memref<1x128xf32, #tpu.memory_space<vmem>>, %arg4: memref<128x32xbf16, #tpu.memory_space<vmem>>, %arg5: memref<1x32xf32, #tpu.memory_space<vmem>>, %arg6: memref<32x32xbf16, #tpu.memory_space<vmem>>, %arg7: memref<1x32xf32, #tpu.memory_space<vmem>>, %arg8: memref<32x128xbf16, #tpu.memory_space<vmem>>, %arg9: memref<1x128xf32, #tpu.memory_space<vmem>>, %arg10: memref<128x256xbf16, #tpu.memory_space<vmem>>, %arg11: memref<1x256xf32, #tpu.memory_space<vmem>>, %arg12: memref<8x256xf32, #tpu.memory_space<vmem>>) attributes {dimension_semantics = [#tpu.dimension_semantics<parallel>], iteration_bounds = array<i64: 2>, scalar_prefetch = 0 : i64, scratch_operands = 0 : i64, tpu.core_type = #tpu.core_type<tc>, window_params = [{transform_indices = @transform_0, window_bounds = array<i64: 8, 256>}, {pipeline_mode = #tpu.pipeline_mode<synchronous>, transform_indices = @transform_1, window_bounds = array<i64: 256, 128>}, {pipeline_mode = #tpu.pipeline_mode<synchronous>, transform_indices = @transform_2, window_bounds = array<i64: 1, 128>}, {pipeline_mode = #tpu.pipeline_mode<synchronous>, transform_indices = @transform_3, window_bounds = array<i64: 128, 32>}, {pipeline_mode = #tpu.pipeline_mode<synchronous>, transform_indices = @transform_4, window_bounds = array<i64: 1, 32>}, {pipeline_mode = #tpu.pipeline_mode<synchronous>, transform_indices = @transform_5, window_bounds = array<i64: 32, 32>}, {pipeline_mode = #tpu.pipeline_mode<synchronous>, transform_indices = @transform_6, window_bounds = array<i64: 1, 32>}, {pipeline_mode = #tpu.pipeline_mode<synchronous>, transform_indices = @transform_7, window_bounds = array<i64: 32, 128>}, {pipeline_mode = #tpu.pipeline_mode<synchronous>, transform_indices = @transform_8, window_bounds = array<i64: 1, 128>}, {pipeline_mode = #tpu.pipeline_mode<synchronous>, transform_indices = @transform_9, window_bounds = array<i64: 128, 256>}, {pipeline_mode = #tpu.pipeline_mode<synchronous>, transform_indices = @transform_10, window_bounds = array<i64: 1, 256>}, {transform_indices = @transform_11, window_bounds = array<i64: 8, 256>}]} {
    %c0 = arith.constant 0 : index
    %c0_0 = arith.constant 0 : index
    %0 = vector.load %arg1[%c0, %c0_0] : memref<8x256xf32, #tpu.memory_space<vmem>>, vector<8x256xf32>
    %1 = arith.truncf %0 : vector<8x256xf32> to vector<8x256xbf16>
    %c0_1 = arith.constant 0 : index
    %c0_2 = arith.constant 0 : index
    %2 = vector.load %arg2[%c0_1, %c0_2] : memref<256x128xbf16, #tpu.memory_space<vmem>>, vector<256x128xbf16>
    %cst = arith.constant dense<0.000000e+00> : vector<8x128xf32>
    %3 = tpu.matmul %1, %2, %cst {dimension_numbers = #tpu.dot_dimension_numbers<[1], [0], [0], [1], [0, 0, 1, 1], [], []>} : vector<8x256xbf16>, vector<256x128xbf16>, vector<8x128xf32> -> vector<8x128xf32>
    %c0_3 = arith.constant 0 : index
    %c0_4 = arith.constant 0 : index
    %4 = vector.load %arg3[%c0_3, %c0_4] : memref<1x128xf32, #tpu.memory_space<vmem>>, vector<1x128xf32>
    %5 = vector.broadcast %4 : vector<1x128xf32> to vector<8x128xf32>
    %6 = arith.addf %3, %5 : vector<8x128xf32>
    %cst_5 = arith.constant 0.000000e+00 : f32
    %7 = vector.broadcast %cst_5 : f32 to vector<8x128xf32>
    %8 = arith.maximumf %6, %7 : vector<8x128xf32>
    %9 = arith.truncf %8 : vector<8x128xf32> to vector<8x128xbf16>
    %c0_6 = arith.constant 0 : index
    %c0_7 = arith.constant 0 : index
    %10 = vector.load %arg4[%c0_6, %c0_7] : memref<128x32xbf16, #tpu.memory_space<vmem>>, vector<128x32xbf16>
    %cst_8 = arith.constant dense<0.000000e+00> : vector<8x32xf32>
    %11 = tpu.matmul %9, %10, %cst_8 {dimension_numbers = #tpu.dot_dimension_numbers<[1], [0], [0], [1], [0, 0, 1, 1], [], []>} : vector<8x128xbf16>, vector<128x32xbf16>, vector<8x32xf32> -> vector<8x32xf32>
    %c0_9 = arith.constant 0 : index
    %c0_10 = arith.constant 0 : index
    %12 = vector.load %arg5[%c0_9, %c0_10] : memref<1x32xf32, #tpu.memory_space<vmem>>, vector<1x32xf32>
    %13 = vector.broadcast %12 : vector<1x32xf32> to vector<8x32xf32>
    %14 = arith.addf %11, %13 : vector<8x32xf32>
    %cst_11 = arith.constant 0.000000e+00 : f32
    %15 = vector.broadcast %cst_11 : f32 to vector<8x32xf32>
    %16 = arith.maximumf %14, %15 : vector<8x32xf32>
    %17 = arith.truncf %16 : vector<8x32xf32> to vector<8x32xbf16>
    %c0_12 = arith.constant 0 : index
    %c0_13 = arith.constant 0 : index
    %18 = vector.load %arg6[%c0_12, %c0_13] : memref<32x32xbf16, #tpu.memory_space<vmem>>, vector<32x32xbf16>
    %cst_14 = arith.constant dense<0.000000e+00> : vector<8x32xf32>
    %19 = tpu.matmul %17, %18, %cst_14 {dimension_numbers = #tpu.dot_dimension_numbers<[1], [0], [0], [1], [0, 0, 1, 1], [], []>} : vector<8x32xbf16>, vector<32x32xbf16>, vector<8x32xf32> -> vector<8x32xf32>
    %c0_15 = arith.constant 0 : index
    %c0_16 = arith.constant 0 : index
    %20 = vector.load %arg7[%c0_15, %c0_16] : memref<1x32xf32, #tpu.memory_space<vmem>>, vector<1x32xf32>
    %21 = vector.broadcast %20 : vector<1x32xf32> to vector<8x32xf32>
    %22 = arith.addf %19, %21 : vector<8x32xf32>
    %cst_17 = arith.constant 0.000000e+00 : f32
    %23 = vector.broadcast %cst_17 : f32 to vector<8x32xf32>
    %24 = arith.maximumf %22, %23 : vector<8x32xf32>
    %25 = arith.truncf %24 : vector<8x32xf32> to vector<8x32xbf16>
    %c0_18 = arith.constant 0 : index
    %c0_19 = arith.constant 0 : index
    %26 = vector.load %arg8[%c0_18, %c0_19] : memref<32x128xbf16, #tpu.memory_space<vmem>>, vector<32x128xbf16>
    %cst_20 = arith.constant dense<0.000000e+00> : vector<8x128xf32>
    %27 = tpu.matmul %25, %26, %cst_20 {dimension_numbers = #tpu.dot_dimension_numbers<[1], [0], [0], [1], [0, 0, 1, 1], [], []>} : vector<8x32xbf16>, vector<32x128xbf16>, vector<8x128xf32> -> vector<8x128xf32>
    %c0_21 = arith.constant 0 : index
    %c0_22 = arith.constant 0 : index
    %28 = vector.load %arg9[%c0_21, %c0_22] : memref<1x128xf32, #tpu.memory_space<vmem>>, vector<1x128xf32>
    %29 = vector.broadcast %28 : vector<1x128xf32> to vector<8x128xf32>
    %30 = arith.addf %27, %29 : vector<8x128xf32>
    %cst_23 = arith.constant 0.000000e+00 : f32
    %31 = vector.broadcast %cst_23 : f32 to vector<8x128xf32>
    %32 = arith.maximumf %30, %31 : vector<8x128xf32>
    %33 = arith.truncf %32 : vector<8x128xf32> to vector<8x128xbf16>
    %c0_24 = arith.constant 0 : index
    %c0_25 = arith.constant 0 : index
    %34 = vector.load %arg10[%c0_24, %c0_25] : memref<128x256xbf16, #tpu.memory_space<vmem>>, vector<128x256xbf16>
    %cst_26 = arith.constant dense<0.000000e+00> : vector<8x256xf32>
    %35 = tpu.matmul %33, %34, %cst_26 {dimension_numbers = #tpu.dot_dimension_numbers<[1], [0], [0], [1], [0, 0, 1, 1], [], []>} : vector<8x128xbf16>, vector<128x256xbf16>, vector<8x256xf32> -> vector<8x256xf32>
    %c0_27 = arith.constant 0 : index
    %c0_28 = arith.constant 0 : index
    %36 = vector.load %arg11[%c0_27, %c0_28] : memref<1x256xf32, #tpu.memory_space<vmem>>, vector<1x256xf32>
    %37 = vector.broadcast %36 : vector<1x256xf32> to vector<8x256xf32>
    %38 = arith.addf %35, %37 : vector<8x256xf32>
    %c0_29 = arith.constant 0 : index
    %c0_30 = arith.constant 0 : index
    %39 = vector.load %arg12[%c0_29, %c0_30] : memref<8x256xf32, #tpu.memory_space<vmem>>, vector<8x256xf32>
    tpu.vector_store %arg12[%c0_29, %c0_30], %38 {strides = array<i32>} : memref<8x256xf32, #tpu.memory_space<vmem>>, vector<8x256xf32>,
    return
  }
  func.func @transform_0(%arg0: i32) -> (i32, i32) {
    %c0_i32 = arith.constant 0 : i32
    %c0_i32_0 = arith.constant 0 : i32
    return %arg0, %c0_i32 : i32, i32
  }
  func.func @transform_1(%arg0: i32) -> (i32, i32) {
    %c0_i32 = arith.constant 0 : i32
    %c0_i32_0 = arith.constant 0 : i32
    %c0_i32_1 = arith.constant 0 : i32
    return %c0_i32, %c0_i32_0 : i32, i32
  }
  func.func @transform_2(%arg0: i32) -> (i32, i32) {
    %c0_i32 = arith.constant 0 : i32
    %c0_i32_0 = arith.constant 0 : i32
    %c0_i32_1 = arith.constant 0 : i32
    return %c0_i32, %c0_i32_0 : i32, i32
  }
  func.func @transform_3(%arg0: i32) -> (i32, i32) {
    %c0_i32 = arith.constant 0 : i32
    %c0_i32_0 = arith.constant 0 : i32
    %c0_i32_1 = arith.constant 0 : i32
    return %c0_i32, %c0_i32_0 : i32, i32
  }
  func.func @transform_4(%arg0: i32) -> (i32, i32) {
    %c0_i32 = arith.constant 0 : i32
    %c0_i32_0 = arith.constant 0 : i32
    %c0_i32_1 = arith.constant 0 : i32
    return %c0_i32, %c0_i32_0 : i32, i32
  }
  func.func @transform_5(%arg0: i32) -> (i32, i32) {
    %c0_i32 = arith.constant 0 : i32
    %c0_i32_0 = arith.constant 0 : i32
    %c0_i32_1 = arith.constant 0 : i32
    return %c0_i32, %c0_i32_0 : i32, i32
  }
  func.func @transform_6(%arg0: i32) -> (i32, i32) {
    %c0_i32 = arith.constant 0 : i32
    %c0_i32_0 = arith.constant 0 : i32
    %c0_i32_1 = arith.constant 0 : i32
    return %c0_i32, %c0_i32_0 : i32, i32
  }
  func.func @transform_7(%arg0: i32) -> (i32, i32) {
    %c0_i32 = arith.constant 0 : i32
    %c0_i32_0 = arith.constant 0 : i32
    %c0_i32_1 = arith.constant 0 : i32
    return %c0_i32, %c0_i32_0 : i32, i32
  }
  func.func @transform_8(%arg0: i32) -> (i32, i32) {
    %c0_i32 = arith.constant 0 : i32
    %c0_i32_0 = arith.constant 0 : i32
    %c0_i32_1 = arith.constant 0 : i32
    return %c0_i32, %c0_i32_0 : i32, i32
  }
  func.func @transform_9(%arg0: i32) -> (i32, i32) {
    %c0_i32 = arith.constant 0 : i32
    %c0_i32_0 = arith.constant 0 : i32
    %c0_i32_1 = arith.constant 0 : i32
    return %c0_i32, %c0_i32_0 : i32, i32
  }
  func.func @transform_10(%arg0: i32) -> (i32, i32) {
    %c0_i32 = arith.constant 0 : i32
    %c0_i32_0 = arith.constant 0 : i32
    %c0_i32_1 = arith.constant 0 : i32
    return %c0_i32, %c0_i32_0 : i32, i32
  }
  func.func @transform_11(%arg0: i32) -> (i32, i32) {
    %c0_i32 = arith.constant 0 : i32
    %c0_i32_0 = arith.constant 0 : i32
    return %arg0, %c0_i32 : i32, i32
  }
}

</mosaic_0001>

<bundles_post_ra>
// kernel: tpu_custom_call.1
= control target key start
LH: loop header
LB: loop body
LE: loop exit
PB: predicated region body
PF: predicated region fallthrough
CT: control target
= control target key end

     0   :  { %16 = vsyncpa [#allocation3], 0  ;;  %s1795_s0 = inlined_call_operand.vmem [shape: f32[12,256], index: 0, kind: input, shape index: {}]   ;;  %s1796_s1 = inlined_call_operand.hbm [shape: bf16[256,128], index: 1, kind: input, shape index: {}]   ;;  %s1797_s2 = inlined_call_operand.vmem [shape: f32[1,128], index: 2, kind: input, shape index: {}]   ;;  %s1798_s3 = inlined_call_operand.vmem [shape: bf16[128,32], index: 3, kind: input, shape index: {}]   ;;  %s1799_s4 = inlined_call_operand.vmem [shape: f32[1,32], index: 4, kind: input, shape index: {}]   ;;  %s1800_s5 = inlined_call_operand.vmem [shape: bf16[32,32], index: 5, kind: input, shape index: {}]   ;;  %s1801_s6 = inlined_call_operand.vmem [shape: f32[1,32], index: 6, kind: input, shape index: {}]   ;;  %s1802_s7 = inlined_call_operand.vmem [shape: bf16[32,128], index: 7, kind: input, shape index: {}]   ;;  %s1803_s8 = inlined_call_operand.vmem [shape: f32[1,128], index: 8, kind: input, shape index: {}]   ;;  %s1804_s9 = inlined_call_operand.hbm [shape: bf16[128,256], index: 9, kind: input, shape index: {}]   ;;  %s1805_s10 = inlined_call_operand.vmem [shape: f32[1,256], index: 10, kind: input, shape index: {}]   ;;  %s1806_s11 = inlined_call_operand.hbm [shape: f32[12,256], index: 11, kind: output, shape index: {}]  }
   0x1   :  { %17 = vsyncpa [#allocation6], 0 }
   0x2   :  { %18 = vsyncpa [#allocation4], 0 }
   0x3   :  { %20 = vsyncpa [#allocation4 + $0x1], 0  ;;  %s1552_s17 = smov 0   ;;  %s1554_s18 = smov 0  }
   0x4   :  { %s1556_s19 = smov 0   ;;  %s1558_s20 = smov 0  }
   0x5 LB: > { %1815 = sst [smem:[#allocation11_spill]] %s1468_s17  ;;  %s1573_s21 = sadd.s32 4294967295, %s1480_s20   ;;  %s1480_s20 = sphi %s1558_s20, %s1833_s20   ;;  %s1476_s19 = sphi %s1556_s19, %s1835_s19   ;;  %s1472_s18 = sphi %s1554_s18, %s1837_s18   ;;  %s1468_s17 = sphi %s1552_s17, %s1836_s17  }
   0x6   : > { %1816 = sst [smem:[#allocation12_spill]] %s1476_s19  ;;  %s1094_s22 = sadd.s32 4294967294, %s1480_s20  }
   0x7   : > { %s1577_s23 = sadd.s32 1, %s1480_s20   ;;  %s269_s24 = sadd.s32 1, %s1476_s19 }
   0x8   : > { %1817 = sst [smem:[#allocation13_spill]] %s1577_s23  ;;  %s266_s25 = ssub.s32 %s1480_s20, %s1577_s23 }
   0x9   : > { %p279_p0 = scmp.ne.s32.totalorder %s1476_s19, %s1472_s18  ;;  %p267_p1 = scmp.eq.s32.totalorder %s266_s25, 0 }
   0xa   : > { %p280_p2 = scmp.eq.s32.totalorder %s1573_s21, 1  ;;  %p285_p3 = scmp.ne.s32.totalorder %s1472_s18, %s1468_s17 }
   0xb   : > { %p286_p4 = scmp.eq.s32.totalorder %s1094_s22, 1  ;;  %p1095_p7 = scmp.ge.s32.totalorder %s1480_s20, 1 }
   0xc   : > { %s1588_s26 = scalar_select %p267_p1, %s1476_s19, %s269_s24  }
   0xd   : > { %p1590_p5 = por %p280_p2, %p279_p0  ;;  %p1594_p6 = por %p286_p4, %p285_p3 }
   0xe   : > { %1818 = sst [smem:[#allocation14_spill]] %s1588_s26  ;;  %p293_p8 = scmp.lt.s32.totalorder %s1480_s20, 3 }
   0xf   : > { %s1819_s27 = scalar_select %p1590_p5, 1, 0 }
  0x10   : > { %s1820_s28 = scalar_select %p1594_p6, 1, 0 }
  0x11   : > { %p1808_p9 = scmp.eq.s32.totalorder %s1573_s21, 0  ;;  %p1601_p10 = pnand %p1095_p7, %p293_p8 }
  0x12   : > { %1821 = sst [smem:[#allocation15_spill]] %s1820_s28  ;;  %s1482_s30 = smov [#allocation2]  }
  0x13   : > { %s1822_s29 = scalar_select %p1601_p10, 1, 0 }
  0x14   : > { %s305_s12 = sshll.u32 %s1482_s30, 4  ;;  %p1245_p11 = pneg %p1601_p10  ;;  %s306_s12 = int_to_ptr.vmem [resolvable:$true] %s305_s12 }
  0x15   : > { %s1483_s14 = smov [#allocation5]   ;;  %s1354_s24 = scalar_lea.hbm %s1796_s1, 2048 }
  0x16   : > { %p1609_p12 = pnand %p1808_p9, %p1245_p11  ;;  %s339_s15 = sshll.u32 %s1483_s14, 4  ;;  %s1613_s15 = int_to_ptr.vmem [resolvable:$true] %s339_s15 }
  0x17   : > { %p1355_p13 = scmp.ne.s32.totalorder %s1796_s1, %s1354_s24  ;;  %p1361_p3 = scmp.lt.u32.totalorder %s1354_s24, %s1796_s1 }
  0x18   : > { %p1356_p0 = pneg %p1609_p12 }
  0x1a   : > { %p1357_p1 = pnand %p1356_p0, %p1355_p13 }
  0x1c   : > { %p1358_p2 = pneg %p1357_p1 }
  0x1e   : > { %p1363_p4 = pnand %p1361_p3, %p1358_p2 }
  0x20   : > { %1366 = shalt.err (!%p1363_p4)
}
  0x21   : > { %s1367_s14 = scalar_lea.vmem %s306_s12, 2048  ;;  %p1375_p9 = scmp.lt.s32.totalorder %s306_s12, %s306_s12 }
  0x22   : > { %p1368_p7 = scmp.ne.s32.totalorder %s306_s12, %s1367_s14  ;;  %p1376_p6 = scmp.lt.s32.totalorder %s1367_s14, %s1367_s14 }
  0x24   : > { %p1370_p8 = pnand %p1368_p7, %p1356_p0  ;;  %p1377_p5 = por %p1376_p6, %p1375_p9 }
  0x26   : > { %p1371_p11 = pneg %p1370_p8 }
  0x28   : > { %p1378_p10 = pnand %p1377_p5, %p1371_p11 }
  0x2a   : > { %1381 = shalt.err (!%p1378_p10)
}
  0x2b   : > { %s1484_s16 = smov 64   ;;  %s1485_s22 = smov 4  }
  0x2c   : > { %1248 = dma.hbm_to_vmem [thread:$0]  (!%p1609_p12), %s1796_s1, 2048, %s306_s12, [#allocation3], %s1484_s16, %s1484_s16, %s1485_s22  }
  0x2d   : > { %s1382_s30 = scalar_lea.hbm %s1804_s9, 2048 }
  0x2e   : > { %p1383_p13 = scmp.ne.s32.totalorder %s1804_s9, %s1382_s30  ;;  %p1389_p9 = scmp.lt.u32.totalorder %s1382_s30, %s1804_s9 }
  0x30   : > { %p1385_p5 = pnand %p1383_p13, %p1356_p0 }
  0x32   : > { %p1386_p6 = pneg %p1385_p5 }
  0x34   : > { %p1391_p10 = pnand %p1389_p9, %p1386_p6 }
  0x36   : > { %1394 = shalt.err (!%p1391_p10)
}
  0x37   : > { %s1395_s12 = scalar_lea.vmem %s1613_s15, 2048  ;;  %p1403_p4 = scmp.lt.s32.totalorder %s1613_s15, %s1613_s15 }
  0x38   : > { %p1396_p1 = scmp.ne.s32.totalorder %s1613_s15, %s1395_s12  ;;  %p1404_p7 = scmp.lt.s32.totalorder %s1395_s12, %s1395_s12 }
  0x3a   : > { %p1398_p2 = pnand %p1396_p1, %p1356_p0  ;;  %p1405_p8 = por %p1404_p7, %p1403_p4 }
  0x3c   : > { %p1399_p3 = pneg %p1398_p2 }
  0x3e   : > { %p1406_p11 = pnand %p1405_p8, %p1399_p3 }
  0x40   : > { %1409 = shalt.err (!%p1406_p11)
}
  0x41   : > { %s1486_s17 = smov 128   ;;  %s1487_s23 = smov 8  }
  0x42   : > { %1251 = dma.hbm_to_vmem [thread:$0]  (!%p1609_p12), %s1804_s9, 2048, %s1613_s15, [#allocation6], %s1486_s17, %s1486_s17, %s1487_s23  }
  0x43   : > { %p1824_p13 = scmp.ne.s32.totalorder %s1822_s29, 0 }
  0x44   : > { %p1825_p0 = scmp.eq.s32.totalorder (!%p1824_p13), %s1573_s21, 0 }
  0x45   : > { %366 = sbr.rel (%p1824_p13) target bundleno = 1217 (0x4c1), region = 64 }
  0x4c   : > { %1455 = dma.done.wait (%p1825_p0), [#allocation3], 2048   ;;  %p1826_p5 = pmov %p1825_p0 }
  0x4d   : > { %p1827_p6 = pmov %p1825_p0 }
  0x4e   : > { %1457 = vsyncadd (%p1826_p5), [#allocation3], 4294965248 }
  0x4f   : > { %1459 = dma.done.wait (%p1827_p6), [#allocation6], 2048   ;;  %p1828_p9 = pmov %p1825_p0 }
  0x50   : > { %v1488_v0 = vmov 0.0   ;;  %v1302_v1 = vld [vmem:[#allocation2 + $0x40] sm:$0xff]   ;;  %v1304_v3 = vld [vmem:[#allocation2 + $0x48] sm:$0xff]   ;;  %p410_p12 = scmp.lt.s32.totalorder %s1573_s21, 1  ;;  %v1306_v5 = vld [vmem:[#allocation2 + $0x50] sm:$0xff]   ;;  %vm1489_vm0 = vmmov 0  }
  0x51   : > { %1461 = vsyncadd (%p1828_p9), [#allocation6], 4294965248  ;;  %1199 = vmatprep.subr.bf16.mxu1 %v1488_v0  ;;  %v1303_v2 = vld [vmem:[#allocation2] sm:$0xff]   ;;  %1162 = vmatprep.subr.bf16.mxu0 %v1302_v1  ;;  %v1305_v4 = vld [vmem:[#allocation2 + $0x8] sm:$0xff]   ;;  %vm733_vm1 = vcmask 261120   ;;  %s407_s25 = sand.u32 1, %s1472_s18  }
  0x52   : > { %1163 = vmatpush3.bf16.msra.mxu0 %v1303_v2  ;;  %s411_s29 = scalar_select %p410_p12, %s1573_s21, 1  ;;  %v1307_v6 = vld [vmem:[#allocation2 + $0x10] sm:$0xff]   ;;  %v1308_v7 = vld [vmem:[#allocation2 + $0x58] sm:$0xff]   ;;  %v1310_v9 = vld [vmem:[#allocation2 + $0x60] sm:$0xff]   ;;  %1215 = vmatprep.mubr.msk.bf16.mxu1 %vm1489_vm0, %v1488_v0 }
  0x53   : > { %1164 = vmatprep.subr.bf16.mxu0 %v1304_v3  ;;  %v1309_v8 = vld [vmem:[#allocation2 + $0x18] sm:$0xff]   ;;  %v1311_v10 = vld [vmem:[#allocation2 + $0x20] sm:$0xff]   ;;  %v1312_v11 = vld [vmem:[#allocation2 + $0x68] sm:$0xff]   ;;  %s1102_s30 = sshll.u32 %s407_s25, 4  ;;  %s1161_s17 = sshll.u32 %s1573_s21, 8 }
  0x54   : > { %s1160_s13 = sshll.u32 %s411_s29, 4  ;;  %v1318_v14 = vld [vmem:[%s1798_s3] sm:$0xff]   ;;  %v1313_v15 = vld [vmem:[#allocation2 + $0x28] sm:$0xff]   ;;  %v1314_v16 = vld [vmem:[#allocation2 + $0x70] sm:$0xff]   ;;  %s409_s23 = scalar_lea.vmem [#allocation7], %s1102_s30 }
  0x55   : > { %s414_s19 = scalar_lea.vmem %s1795_s0, %s1160_s13  ;;  %1200 = vmatpush3.bf16.msra.mxu1 %v1318_v14  ;;  %v1319_v17 = vld [vmem:[%s1798_s3 + $0x8] sm:$0xff]   ;;  %v1315_v18 = vld [vmem:[#allocation2 + $0x30] sm:$0xff]   ;;  %v1316_v19 = vld [vmem:[#allocation2 + $0x78] sm:$0xff]   ;;  %s1013_s28 = sshll.u32 %s409_s23, 4  ;;  %s1755_s28 = int_to_ptr.vmem [resolvable:$true] %s1013_s28 }
  0x56   : > { %1165 = vmatpush3.bf16.msra.mxu0 %v1305_v4  ;;  %v417_v12 = vld [vmem:[%s414_s19 + $0x8] sm:$0xff]  ;;  %1201 = vmatprep.subr.bf16.mxu1 %v1488_v0  ;;  %v1320_v20 = vld [vmem:[%s1798_s3 + $0x10] sm:$0xff]   ;;  %v1317_v21 = vld [vmem:[#allocation2 + $0x38] sm:$0xff]   ;;  %s1753_s13 = scalar_lea.hbm %s1806_s11, %s1161_s17  ;;  %s999_s21 = scalar_lea.sflag [#allocation4], %s407_s25 }
  0x57   : > { %1166 = vmatprep.subr.bf16.mxu0 %v1306_v5  ;;  %v419_v13 = vpack.c.bf16 %v417_v12, %v417_v12  ;;  %v416_v22 = vld [vmem:[%s414_s19] sm:$0xff]  ;;  %v1321_v23 = vld [vmem:[%s1798_s3 + $0x18] sm:$0xff]   ;;  %v1323_v26 = vld [vmem:[%s1798_s3 + $0x28] sm:$0xff]   ;;  %s1410_s15 = scalar_lea.vmem %s1755_s28, 256  ;;  %p1829_p1 = scmp.ne.s32.totalorder %s1819_s27, 0 }
  0x58   : > { %v418_v24 = vpack.c.bf16 %v416_v22, %v416_v22  ;;  %v1322_v25 = vld [vmem:[%s1798_s3 + $0x20] sm:$0xff]   ;;  %v1324_v27 = vld [vmem:[%s1798_s3 + $0x30] sm:$0xff]   ;;  %v1325_v28 = vld [vmem:[%s1798_s3 + $0x38] sm:$0xff]   ;;  %p1411_p10 = scmp.ne.s32.totalorder %s1755_s28, %s1410_s15  ;;  %s1491_s22 = smov [#allocation7]  }
  0x59   : > { %587 = vmatprep.mubr.bf16.mxu0 %v419_v13  ;;  %1202 = vmatpush3.bf16.msra.mxu1 %v1319_v17  ;;  %v1105_v30 = vld [vmem:[%s1797_s2] ss:$0 sm:$0xff]  ;;  %v1327_v39 = vld [vmem:[%s1800_s5 + $0x8] sm:$0xff]   ;;  %v1335_v52 = vld [vmem:[#allocation5 + $0x14] ss:$8 sps:$4 sm:$0xff]   ;;  %s1414_s19 = sshll.u32 %s1491_s22, 4  ;;  %s1415_s19 = int_to_ptr.vmem [resolvable:$false] %s1414_s19 }
  0x5a   : > { %1167 = vmatpush3.bf16.msra.mxu0 %v1307_v6  ;;  %1203 = vmatprep.subr.bf16.mxu1 %v1488_v0  ;;  %v1326_v37 = vld [vmem:[%s1800_s5] sm:$0xff]   ;;  %v1329_v49 = vld [vmem:[%s1802_s7 + $0x8] sm:$0xff]   ;;  %v1333_v53 = vld [vmem:[#allocation5 + $0x10] ss:$8 sps:$4 sm:$0xff]   ;;  %p1412_p2 = pnand %p1411_p10, %p1829_p1  ;;  %s1416_s26 = scalar_lea.vmem %s1415_s19, 512 }
  0x5b   : > { %1168 = vmatprep.subr.bf16.mxu0 %v1308_v7  ;;  %v1122_v40 = vld [vmem:[%s1799_s4] ss:$0 sm:$0xff]  ;;  %v1332_v51 = vld [vmem:[#allocation5 + $0x4] ss:$8 sps:$4 sm:$0xff]   ;;  %v1341_v56 = vld [vmem:[#allocation5 + $0x34] ss:$8 sps:$4 sm:$0xff]   ;;  %p1417_p4 = scmp.lt.s32.totalorder %s1755_s28, %s1415_s19  ;;  %p1418_p7 = scmp.lt.s32.totalorder %s1416_s26, %s1410_s15 }
  0x5c   : > { %v1328_v47 = vld [vmem:[%s1802_s7] sm:$0xff]   ;;  %v1339_v57 = vld [vmem:[#allocation5 + $0x30] ss:$8 sps:$4 sm:$0xff]   ;;  %v1347_v60 = vld [vmem:[#allocation5 + $0x54] ss:$8 sps:$4 sm:$0xff]   ;;  %p1413_p3 = pneg %p1412_p2 }
  0x5d   : > { %1204 = vmatpush3.bf16.msra.mxu1 %v1320_v20  ;;  %v1330_v50 = vld [vmem:[#allocation5] ss:$8 sps:$4 sm:$0xff]   ;;  %v1338_v54 = vld [vmem:[#allocation5 + $0x24] ss:$8 sps:$4 sm:$0xff]   ;;  %v1345_v61 = vld [vmem:[#allocation5 + $0x50] ss:$8 sps:$4 sm:$0xff]   ;;  %p1419_p8 = por %p1418_p7, %p1417_p4 }
  0x5e   : > { %1169 = vmatpush3.bf16.msra.mxu0 %v1309_v8  ;;  %1205 = vmatprep.subr.bf16.mxu1 %v1488_v0  ;;  %v1336_v55 = vld [vmem:[#allocation5 + $0x20] ss:$8 sps:$4 sm:$0xff]   ;;  %v1344_v58 = vld [vmem:[#allocation5 + $0x44] ss:$8 sps:$4 sm:$0xff]   ;;  %v1353_v8 = vld [vmem:[#allocation5 + $0x74] ss:$8 sps:$4 sm:$0xff]  }
  0x5f   : > { %1170 = vmatprep.subr.bf16.mxu0 %v1310_v9  ;;  %v1342_v59 = vld [vmem:[#allocation5 + $0x40] ss:$8 sps:$4 sm:$0xff]   ;;  %v1350_v62 = vld [vmem:[#allocation5 + $0x64] ss:$8 sps:$4 sm:$0xff]   ;;  %v1351_v9 = vld [vmem:[#allocation5 + $0x70] ss:$8 sps:$4 sm:$0xff]   ;;  %p1420_p11 = pnand %p1419_p8, %p1413_p3 }
  0x60   : > { %v1348_v63 = vld [vmem:[#allocation5 + $0x60] ss:$8 sps:$4 sm:$0xff]  }
  0x61   : > { %1206 = vmatpush3.bf16.msra.mxu1 %v1321_v23  ;;  %v863_v22 = vld [vmem:[%s1805_s10] sm:$0x3] }
  0x62   : > { %1171 = vmatpush3.bf16.msra.mxu0 %v1311_v10  ;;  %1207 = vmatprep.subr.bf16.mxu1 %v1488_v0  ;;  %v1490_v10 = vmov 0  }
  0x63   : > { %1172 = vmatprep.subr.bf16.mxu0 %v1312_v11  ;;  %v1135_v11 = vld [vmem:[%s1803_s8] ss:$0 sm:$0xff] }
  0x65   : > { %1208 = vmatpush3.bf16.msra.mxu1 %v1322_v25 }
  0x66   : > { %1173 = vmatpush3.bf16.msra.mxu0 %v1313_v15  ;;  %1209 = vmatprep.subr.bf16.mxu1 %v1488_v0 }
  0x67   : > { %1174 = vmatprep.subr.bf16.mxu0 %v1314_v16 }
  0x69   : > { %1210 = vmatpush3.bf16.msra.mxu1 %v1323_v26 }
  0x6a   : > { %1175 = vmatpush3.bf16.msra.mxu0 %v1315_v18  ;;  %1211 = vmatprep.subr.bf16.mxu1 %v1488_v0 }
  0x6b   : > { %1176 = vmatprep.subr.bf16.mxu0 %v1316_v19  ;;  %v865_v19 = vlaneseq }
  0x6d   : > { %1212 = vmatpush3.bf16.msra.mxu1 %v1324_v27  ;;  %v866_v20 = vshrl.u32 %v865_v19, 7 }
  0x6e   : > { %1177 = vmatpush3.bf16.msra.mxu0 %v1317_v21  ;;  %1213 = vmatprep.subr.bf16.mxu1 %v1488_v0 }
  0x6f   : > { %955 = vmatprep.subr.bf16.mxu0 %v1332_v51  ;;  %v867_v21 = vsub.s32 0, %v866_v20  ;;  %v871_v23 = vsub.s32 1, %v866_v20 }
  0x71   : > { %588 = vmatmul.mubr.bf16.vlgmr.msra.gmra.mrb[0].mxu0 %v418_v24  ;;  %1214 = vmatpush3.bf16.msra.mxu1 %v1325_v28  ;;  %v868_v24 = vrot.slane %v863_v22, %v867_v21  ;;  %v872_v25 = vrot.slane %v863_v22, %v871_v23 }
  0x72   : > { %1219 = vmatprep.subr.bf16.mxu1 %v1488_v0  ;;  %956 = vmatpush1.bf16.msra.mxu0 %v1330_v50 }
  0x73   : > { %957 = vmatprep.subr.bf16.mxu0 %v1335_v52  ;;  %987 = vmatprep.mubr.bf16.mxu0 %v1490_v10 }
  0x76   : > { %958 = vmatpush1.bf16.msra.mxu0 %v1333_v53 }
  0x77   : > { %959 = vmatprep.subr.bf16.mxu0 %v1338_v54 }
  0x7a   : > { %960 = vmatpush1.bf16.msra.mxu0 %v1336_v55 }
  0x7b   : > { %961 = vmatprep.subr.bf16.mxu0 %v1341_v56 }
  0x7e   : > { %962 = vmatpush1.bf16.msra.mxu0 %v1339_v57 }
  0x7f   : > { %963 = vmatprep.subr.bf16.mxu0 %v1344_v58 }
  0x82   : > { %964 = vmatpush1.bf16.msra.mxu0 %v1342_v59 }
  0x83   : > { %965 = vmatprep.subr.bf16.mxu0 %v1347_v60 }
  0x86   : > { %966 = vmatpush1.bf16.msra.mxu0 %v1345_v61 }
  0x87   : > { %967 = vmatprep.subr.bf16.mxu0 %v1350_v62 }
  0x8a   : > { %968 = vmatpush1.bf16.msra.mxu0 %v1348_v63 }
  0x8b   : > { %969 = vmatprep.subr.bf16.mxu0 %v1353_v8 }
  0x8e   : > { %970 = vmatpush1.bf16.msra.mxu0 %v1351_v9 }
 0x144   : > { %v1178_v29 = vpop.f32.mrb[0].mxu0 }
 0x145   : > { %v1179_v31 = vpop.f32.mrb[1].mxu0 }
 0x146   : > { %v1180_v32 = vadd.f32 %v1179_v31, %v1178_v29  ;;  %v1181_v33 = vpop.f32.mrb[2].mxu0 }
 0x147   : > { %v1182_v34 = vpop.f32.mrb[3].mxu0 }
 0x148   : > { %v590_v35 = vadd.f32 %v1180_v32, %v1105_v30 }
 0x14a   : > { %v595_v36 = vmax.f32 %v590_v35, 0.0 }
 0x14c   : > { %v596_v38 = vpack.c.bf16 %v595_v36, %v595_v36 }
 0x14e   : > { %1216 = vmatmul.mubr.bf16.vlgmr.msra.gmra.mrb[0].mxu1 %v596_v38 }
 0x14f   : > { %1220 = vmatpush3.bf16.msra.mxu1 %v1326_v37  ;;  %1223 = vmatprep.mubr.msk.bf16.mxu1 %vm1489_vm0, %v1488_v0 }
 0x150   : > { %1221 = vmatprep.subr.bf16.mxu1 %v1488_v0 }
 0x153   : > { %1222 = vmatpush3.bf16.msra.mxu1 %v1327_v39 }
 0x154   : > { %1227 = vmatprep.subr.bf16.mxu1 %v1488_v0 }
 0x221   : > { %v702_v41 = vpop.f32.mrb[0].mxu1 }
 0x222   : > { %v703_v42 = vadd.f32 %v1122_v40, %v702_v41  ;;  %v1217_v43 = vpop.f32.mrb[1].mxu1 }
 0x223   : > { %v705_v44 = vpop.f32.mrb[2].mxu1 }
 0x224   : > { %v708_v45 = vmax.f32 %v703_v42, 0.0  ;;  %v1218_v46 = vpop.f32.mrb[3].mxu1 }
 0x226   : > { %v709_v48 = vpack.c.bf16 %v708_v45, %v708_v45 }
 0x228   : > { %1224 = vmatmul.mubr.msk.bf16.vlgmr.msra.gmra.mrb[4].mxu1 %vm733_vm1, %v709_v48 }
 0x229   : > { %1228 = vmatpush3.bf16.msra.mxu1 %v1328_v47  ;;  %1231 = vmatprep.mubr.msk.bf16.mxu1 %vm1489_vm0, %v1488_v0 }
 0x22a   : > { %1229 = vmatprep.subr.bf16.mxu1 %v1488_v0  ;;  %v1131_v0 = vld [vmem:[%s1801_s6] ss:$0 sm:$0xff] }
 0x22d   : > { %1230 = vmatpush3.bf16.msra.mxu1 %v1329_v49 }
 0x2fb   : > { %v771_v1 = vpop.f32.mrb[4].mxu1 }
 0x2fc   : > { %v772_v2 = vadd.f32 %v1131_v0, %v771_v1  ;;  %v1225_v3 = vpop.f32.mrb[5].mxu1 }
 0x2fd   : > { %v774_v4 = vpop.f32.mrb[6].mxu1 }
 0x2fe   : > { %v777_v5 = vmax.f32 %v772_v2, 0.0  ;;  %v1226_v6 = vpop.f32.mrb[7].mxu1 }
 0x300   : > { %v778_v7 = vpack.c.bf16 %v777_v5, %v777_v5 }
 0x302   : > { %1232 = vmatmul.mubr.msk.bf16.vlgmr.msra.gmra.mrb[8].mxu1 %vm733_vm1, %v778_v7 }
 0x3d5   : > { %v839_v12 = vpop.f32.mrb[8].mxu1 }
 0x3d6   : > { %v840_v13 = vadd.f32 %v1135_v11, %v839_v12  ;;  %v1233_v14 = vpop.f32.mrb[9].mxu1 }
 0x3d7   : > { %v842_v15 = vpop.f32.mrb[10].mxu1 }
 0x3d8   : > { %v845_v16 = vmax.f32 %v840_v13, 0.0  ;;  %v1234_v17 = vpop.f32.mrb[11].mxu1 }
 0x3da   : > { %v846_v18 = vpack.c.bf16 %v845_v16, %v845_v16 }
 0x3dc   : > { %988 = vmatmul.mubr.bf16.vlgmr.msra.gmra.mrb[4].mxu0 %v846_v18 }
 0x4af   : > { %v989_v26 = vpop.f32.mrb[4].mxu0 }
 0x4b0   : > { %v990_v27 = vadd.f32 %v989_v26, %v868_v24  ;;  %v991_v28 = vpop.f32.mrb[5].mxu0 }
 0x4b1   : > { %v992_v29 = vadd.f32 %v991_v28, %v872_v25  ;;  %v993_v30 = vpop.f32.mrb[6].mxu0 }
 0x4b2   : > { %996 = vst [vmem:[%s409_s23] sm:$0xff] %v990_v27  ;;  %v994_v31 = vpop.f32.mrb[7].mxu0 }
 0x4b3   : > { %997 = vst [vmem:[%s409_s23 + $0x8] sm:$0xff] %v992_v29 }
 0x4b4   : > { %1423 = shalt.err (!%p1420_p11)
}
 0x4b5   : > { %s1424_s24 = scalar_lea.hbm %s1753_s13, 256  ;;  %s1428_s14 = scalar_lea.hbm %s1806_s11, 512 }
 0x4b6   : > { %p1425_p13 = scmp.ne.s32.totalorder %s1753_s13, %s1424_s24  ;;  %p1429_p6 = scmp.lt.u32.totalorder %s1753_s13, %s1806_s11 }
 0x4b7   : > { %p1430_p9 = scmp.lt.u32.totalorder %s1428_s14, %s1424_s24  ;;  %p1432_p10 = scmp.lt.u32.totalorder %s1424_s24, %s1753_s13 }
 0x4b8   : > { %p1426_p0 = pnand %p1425_p13, %p1829_p1 }
 0x4b9   : > { %p1431_p12 = por %p1430_p9, %p1429_p6 }
 0x4ba   : > { %p1427_p5 = pneg %p1426_p0 }
 0x4bb   : > { %p1433_p2 = por %p1432_p10, %p1431_p12 }
 0x4bd   : > { %p1434_p3 = pnand %p1433_p2, %p1427_p5 }
 0x4bf   : > { %1437 = shalt.err (!%p1434_p3)
}
 0x4c0   : > { %1243 = dma.vmem_to_hbm [thread:$0]  (%p1829_p1), %s1755_s28, 256, %s1753_s13, %s999_s21  }
 0x4c1 PF: > { %s1830_s23 = sld [smem:[#allocation11_spill]]  ;;  %s1831_s16 = sld [smem:[#allocation15_spill]] }
 0x4c2   : > { %p1260_p4 = scmp.ge.s32.totalorder %s1480_s20, 2 }
 0x4c7   : > { %s1025_s29 = sand.u32 1, %s1830_s23   ;;  %p1832_p7 = scmp.ne.s32.totalorder %s1831_s16, 0 }
 0x4c8   : > { %s1026_s15 = scalar_lea.sflag [#allocation4], %s1025_s29 }
 0x4c9   : > { %p1253_p8 = pnand %p1260_p4, %p1832_p7 }
 0x4cb   : > { %1463 = dma.done.wait (!%p1253_p8), %s1026_s15, 256  }
 0x4cc   : > { %1465 = vsyncadd (!%p1253_p8), %s1026_s15, 4294967040  ;;  %s1833_s20 = sld [smem:[#allocation13_spill]]  ;;  %s1834_s22 = sld [smem:[#allocation12_spill]] }
 0x4cd   : > { %s1835_s19 = sld [smem:[#allocation14_spill]]  ;;  %s1836_s17 = smov %s1472_s18 }
 0x4d2   : > { %p23_p11 = scmp.ge.s32.totalorder %s1833_s20, 4   ;;  %s1837_s18 = smov %s1834_s22 }
 0x4d4   :  { %25 = sbr.rel (!%p23_p11) target bundleno = 5 (0x5), region = 108 }
 0x4db   :  { %1031 = vsyncpa [#allocation3], 1 }
 0x4dc   :  { %1033 = vsyncpa [#allocation3 + $0x1], 1 }
 0x4dd   :  { %1034 = vsyncpa [#allocation6], 1 }
 0x4de   :  { %1035 = vsyncpa [#allocation4], 1 }
 0x4df   :  { %1037 = vsyncpa [#allocation4 + $0x1], 1 }

</bundles_post_ra>
